<compile_context>
chip_gen: v6e
topology: v6e:2x2x1
jax: 0.10.0
libtpu: 0.0.40
codegen_flags: <defaults>
</compile_context>

<pallas_src>
from functools import partial

import jax
import jax.numpy as jnp
from jax.experimental import pallas as pl
from jax.experimental.pallas import tpu as pltpu


def _norm_kernel(x_ref, o_ref, *, eps: float, n: int):
    # x_ref / o_ref hold one (N, TD) column strip in VMEM.
    x = x_ref[...]                                         # (N, TD) f32
    inv_n = 1.0 / n
    # Two-pass centered form (avoids E[x^2]-mean^2 cancellation); x is read
    # from VMEM once, `centered` is reused for both the variance and the output.
    mean = jnp.sum(x, axis=0, keepdims=True) * inv_n       # (1, TD)
    centered = x - mean                                    # (N, TD)
    var = jnp.sum(centered * centered, axis=0, keepdims=True) * inv_n
    # eps added to std (not var) to match the PyTorch reference exactly.
    # Exact reciprocal on the small (1, TD) row: negligible cost, keeps the
    # hot path as an (N, TD) multiply on the VPU instead of a broadcast divide.
    inv_std = 1.0 / (jnp.sqrt(var) + eps)                  # (1, TD)
    o_ref[...] = centered * inv_std


def _round_up(v: int, m: int) -> int:
    return ((v + m - 1) // m) * m


def _choose_tile_d(n: int, d: int, itemsize: int = 4,
                   vmem_budget_bytes: int = 24 << 20) -> int:
    """Pick a lane-dense (multiple of 128) D-tile that keeps the double-buffered
    input + output strips under a conservative VMEM budget (safe on v7x)."""
    # per D-lane VMEM cost: N rows * itemsize * 2 arrays (in+out) * 2 buffers
    bytes_per_lane = max(n * itemsize * 2 * 2, 1)
    max_lanes = vmem_budget_bytes // bytes_per_lane
    td = (max_lanes // 128) * 128
    td = max(128, min(td, 4096))            # clamp: lane-dense and not excessive
    td = min(td, _round_up(d, 128))         # no point exceeding (padded) D
    return td


def norm(x: jax.Array, eps: float = 1e-6) -> jax.Array:
    """Batch-axis normalization kernel. x: (N, D) float32."""
    N, D = x.shape
    TD = _choose_tile_d(N, D, x.dtype.itemsize)

    # Pad D up to a multiple of the tile so every block is full and lane-dense
    # (only the tail tile carries padding; it is sliced off afterwards).
    D_pad = _round_up(D, TD)
    x_p = x if D_pad == D else jnp.pad(x, ((0, 0), (0, D_pad - D)))

    grid = (D_pad // TD,)
    kernel = partial(_norm_kernel, eps=eps, n=N)

    # NOTE: an (N, TD) strip must fit VMEM; for very large N this would need a
    # two-pass (stats accumulate, then normalize) structure over an N grid axis.
    out_p = pl.pallas_call(
        kernel,
        out_shape=jax.ShapeDtypeStruct((N, D_pad), x.dtype),
        grid_spec=pltpu.PrefetchScalarGridSpec(
            num_scalar_prefetch=0,
            grid=grid,
            in_specs=[pl.BlockSpec((N, TD), lambda j: (0, j))],
            out_specs=pl.BlockSpec((N, TD), lambda j: (0, j)),
        ),
        compiler_params=pltpu.CompilerParams(
            # Columns are independent -> parallel grid axis (2x on v7x megacore).
            dimension_semantics=("parallel",),
            # Explicit scoped-VMEM headroom (v5e default is only 16 MiB);
            # stays under v7x's 64 MiB physical VMEM.
            vmem_limit_bytes=48 << 20,
        ),
    )(x_p)

    return out_p if D_pad == D else out_p[:, :D]


if __name__ == "__main__":
    key = jax.random.PRNGKey(0)
    # Same shape as the PyTorch snippet: x = torch.randn(2, 20)
    x = jax.random.normal(key, (2, 20), dtype=jnp.float32)

    out = norm(x, eps=1e-6)
    out = jax.block_until_ready(out)

    # Reference check in plain JAX (population std, eps added to std).
    mean_ref = jnp.mean(x, axis=0, keepdims=True)
    std_ref = jnp.sqrt(jnp.mean((x - mean_ref) ** 2, axis=0, keepdims=True)) + 1e-6
    ref = (x - mean_ref) / std_ref
    assert jnp.allclose(out, ref, atol=1e-5, rtol=1e-5), "mismatch vs reference"

    print("KERNEL_OK")
</pallas_src>

<mosaic_0001>
module attributes {stable_mosaic.version = 11 : i64} {
  func.func @_norm_kernel(%arg0: i32, %arg1: memref<2x128xf32, #tpu.memory_space<vmem>>, %arg2: memref<2x128xf32, #tpu.memory_space<vmem>>) attributes {dimension_semantics = [#tpu.dimension_semantics<parallel>], iteration_bounds = array<i64: 1>, scalar_prefetch = 0 : i64, scratch_operands = 0 : i64, tpu.core_type = #tpu.core_type<tc>, window_params = [{transform_indices = @transform_0, window_bounds = array<i64: 2, 128>}, {transform_indices = @transform_1, window_bounds = array<i64: 2, 128>}]} {
    %c0 = arith.constant 0 : index
    %c0_0 = arith.constant 0 : index
    %0 = vector.load %arg1[%c0, %c0_0] : memref<2x128xf32, #tpu.memory_space<vmem>>, vector<2x128xf32>
    %cst = arith.constant dense<0.000000e+00> : vector<128xf32>
    %1 = vector.multi_reduction <add>, %0, %cst [0] : vector<2x128xf32> to vector<128xf32>
    %2 = vector.shape_cast %1 : vector<128xf32> to vector<1x128xf32>
    %cst_1 = arith.constant 5.000000e-01 : f32
    %3 = vector.broadcast %cst_1 : f32 to vector<1x128xf32>
    %4 = arith.mulf %2, %3 : vector<1x128xf32>
    %5 = vector.broadcast %4 : vector<1x128xf32> to vector<2x128xf32>
    %6 = arith.subf %0, %5 : vector<2x128xf32>
    %7 = arith.mulf %6, %6 : vector<2x128xf32>
    %cst_2 = arith.constant dense<0.000000e+00> : vector<128xf32>
    %8 = vector.multi_reduction <add>, %7, %cst_2 [0] : vector<2x128xf32> to vector<128xf32>
    %9 = vector.shape_cast %8 : vector<128xf32> to vector<1x128xf32>
    %cst_3 = arith.constant 5.000000e-01 : f32
    %10 = vector.broadcast %cst_3 : f32 to vector<1x128xf32>
    %11 = arith.mulf %9, %10 : vector<1x128xf32>
    %12 = math.sqrt %11 : vector<1x128xf32>
    %cst_4 = arith.constant 9.99999997E-7 : f32
    %13 = vector.broadcast %cst_4 : f32 to vector<1x128xf32>
    %14 = arith.addf %12, %13 : vector<1x128xf32>
    %cst_5 = arith.constant 1.000000e+00 : f32
    %15 = vector.broadcast %cst_5 : f32 to vector<1x128xf32>
    %16 = arith.divf %15, %14 : vector<1x128xf32>
    %17 = vector.broadcast %16 : vector<1x128xf32> to vector<2x128xf32>
    %18 = arith.mulf %6, %17 : vector<2x128xf32>
    %c0_6 = arith.constant 0 : index
    %c0_7 = arith.constant 0 : index
    %19 = vector.load %arg2[%c0_6, %c0_7] : memref<2x128xf32, #tpu.memory_space<vmem>>, vector<2x128xf32>
    tpu.vector_store %arg2[%c0_6, %c0_7], %18 {strides = array<i32>} : memref<2x128xf32, #tpu.memory_space<vmem>>, vector<2x128xf32>,
    return
  }
  func.func @transform_0(%arg0: i32) -> (i32, i32) {
    %c0_i32 = arith.constant 0 : i32
    %c0_i32_0 = arith.constant 0 : i32
    return %c0_i32, %arg0 : i32, i32
  }
  func.func @transform_1(%arg0: i32) -> (i32, i32) {
    %c0_i32 = arith.constant 0 : i32
    %c0_i32_0 = arith.constant 0 : i32
    return %c0_i32, %arg0 : i32, i32
  }
}

</mosaic_0001>

<bundles_post_ra>
// kernel: tpu_custom_call.1
= control target key start
LH: loop header
LB: loop body
LE: loop exit
PB: predicated region body
PF: predicated region fallthrough
CT: control target
= control target key end

     0   :  { %6 = vsyncpa [#allocation3], 0  ;;  %s136_s0 = inlined_call_operand.hbm [shape: f32[2,128], index: 0, kind: input, shape index: {}]   ;;  %s137_s1 = inlined_call_operand.hbm [shape: f32[2,128], index: 1, kind: output, shape index: {}]  }
   0x1   :  { %7 = vsyncpa [#allocation4], 0  ;;  %s118_s6 = smov [#allocation2]  }
   0x2   :  { %s14_s7 = sshll.u32 %s118_s6, 4  ;;  %s15_s7 = int_to_ptr.vmem [resolvable:$true] %s14_s7 }
   0x3   :  { %s82_s8 = scalar_lea.vmem %s15_s7, 32  ;;  %p87_p1 = scmp.lt.s32.totalorder %s15_s7, %s15_s7 }
   0x4   :  { %p83_p0 = scmp.ne.s32.totalorder %s15_s7, %s82_s8  ;;  %p88_p2 = scmp.lt.s32.totalorder %s82_s8, %s82_s8 }
   0x6   :  { %p89_p3 = por %p88_p2, %p87_p1 }
   0x8   :  { %p90_p4 = pnand %p89_p3, %p83_p0 }
   0xa   :  { %93 = shalt.err (!%p90_p4)
}
   0xb   :  { %17 = dma.hbm_to_vmem [thread:$0]  %s136_s0, 32, %s15_s7, [#allocation3]  }
   0xc   :  { %114 = dma.done.wait [#allocation3], 32  }
   0xd   :  { %115 = vsyncadd [#allocation3], 4294967264  ;;  %vm22_vm0 = vcmask 1041408   ;;  %v21_v0 = vld [vmem:[#allocation2] sm:$0x3]  ;;  %s119_s0 = smov [#allocation5]  }
   0xe   :  { %v23_v1 = vsel %vm22_vm0, %v21_v0, 0.0  ;;  %s59_s11 = sshll.u32 %s119_s0, 4  ;;  %s60_s11 = int_to_ptr.vmem [resolvable:$true] %s59_s11 }
   0xf   :  { %v24_v2 = vrot.slane %v23_v1, 4  ;;  %s94_s12 = scalar_lea.vmem %s60_s11, 32  ;;  %p99_p6 = scmp.lt.s32.totalorder %s60_s11, %s60_s11 }
  0x10   :  { %p95_p5 = scmp.ne.s32.totalorder %s60_s11, %s94_s12  ;;  %p100_p7 = scmp.lt.s32.totalorder %s94_s12, %s94_s12 }
  0x11   :  { %v25_v3 = vadd.f32 %v24_v2, %v23_v1 }
  0x12   :  { %p101_p8 = por %p100_p7, %p99_p6 }
  0x13   :  { %v26_v4 = vrot.slane %v25_v3, 2 }
  0x14   :  { %p102_p9 = pnand %p101_p8, %p95_p5 }
  0x15   :  { %v27_v5 = vadd.f32 %v26_v4, %v25_v3 }
  0x17   :  { %v28_v6 = vrot.slane %v27_v5, 1 }
  0x19   :  { %v29_v7 = vadd.f32 %v28_v6, %v27_v5 }
  0x1b   :  { %v30_v8 = vmul.f32 0.5, %v29_v7 }
  0x1d   :  { %v31_v9 = vsub.f32 %v21_v0, %v30_v8 }
  0x1f   :  { %v32_v10 = vmul.f32 %v31_v9, %v31_v9 }
  0x21   :  { %v33_v11 = vsel %vm22_vm0, %v32_v10, 0.0 }
  0x22   :  { %v34_v12 = vrot.slane %v33_v11, 4 }
  0x24   :  { %v35_v13 = vadd.f32 %v34_v12, %v33_v11 }
  0x26   :  { %v36_v14 = vrot.slane %v35_v13, 2 }
  0x28   :  { %v37_v15 = vadd.f32 %v36_v14, %v35_v13 }
  0x2a   :  { %v38_v16 = vrot.slane %v37_v15, 1 }
  0x2c   :  { %v39_v17 = vadd.f32 %v38_v16, %v37_v15 }
  0x2e   :  { %v40_v18 = vmul.f32 0.5, %v39_v17 }
  0x30   :  { %70 = vrsqrt.f32 %v40_v18  ;;  %vm43_vm1 = vcmp.eq.f32.partialorder %v40_v18, inf  ;;  %v46_v20 = vand.u32 2147483648, %v40_v18  ;;  %vm45_vm2 = vcmp.eq.f32.partialorder %v40_v18, 0.0 }
  0x3d   :  { %v71_v19 = vpop.eup %70 }
  0x3e   :  { %v42_v21 = vmul.f32 %v71_v19, %v40_v18 }
  0x40   :  { %v44_v22 = vsel %vm43_vm1, %v40_v18, %v42_v21 }
  0x41   :  { %v47_v23 = vsel %vm45_vm2, %v46_v20, %v44_v22 }
  0x42   :  { %v48_v24 = vadd.f32 1e-06, %v47_v23 }
  0x44   :  { %72 = vrcp.f32 %v48_v24 }
  0x51   :  { %v73_v25 = vpop.eup %72 }
  0x52   :  { %v51_v26 = vmul.f32 %v73_v25, %v31_v9 }
  0x54   :  { %52 = vst [vmem:[#allocation5] sm:$0x3] %v51_v26 }
  0x55   :  { %105 = shalt.err (!%p102_p9)
}
  0x56   :  { %62 = dma.vmem_to_hbm [thread:$0]  %s60_s11, 32, %s137_s1, [#allocation4]  }
  0x57   :  { %116 = dma.done.wait [#allocation4], 32  }
  0x58   :  { %117 = vsyncadd [#allocation4], 4294967264 }
  0x59   :  { %66 = vsyncpa [#allocation3], 1 }
  0x5a   :  { %67 = vsyncpa [#allocation4], 1 }

</bundles_post_ra>
